<compile_context>
chip_gen: v7x
topology: tpu7x:2x2x1
jax: 0.10.0
libtpu: 0.0.40
codegen_flags: <defaults>
</compile_context>

<pallas_src>
import functools

import numpy as np
import jax
import jax.numpy as jnp
from jax.experimental import pallas as pl
from jax.experimental.pallas import tpu as pltpu


def _round_up(x, m):
    return ((x + m - 1) // m) * m


def _round_down(x, m):
    return (x // m) * m


def _moving_avg_kernel(a_idx_ref, starts_ref, a_ref, x_ref, o_ref, *, w_in):
    # a_idx_ref, starts_ref : SMEM (n_t,) int32 (scalar prefetch)
    # a_ref : (n_uniq, TILE_T, W_IN) resident banded averaging matrices
    # x_ref : (1, L_pad, TILE_C)     input slab, resident across the t axis
    # o_ref : (1, TILE_T, TILE_C)
    t = pl.program_id(2)
    start = pl.multiple_of(starts_ref[t], 8)          # 8-aligned sublane window start
    a = a_ref[a_idx_ref[t]]                           # (TILE_T, W_IN)
    win = x_ref[0, pl.ds(start, w_in), :]             # (W_IN, TILE_C) aligned view
    o_ref[0] = jnp.dot(a, win, preferred_element_type=jnp.float32).astype(o_ref.dtype)


def _build_tiles(L, l_pad, n_t, kernel_size, stride, pad, tile_t, w_in):
    """8-aligned per-tile window starts + deduped banded averaging matrices (f32)."""
    starts = np.zeros((n_t,), np.int32)
    a_idx = np.zeros((n_t,), np.int32)
    uniq, keys = [], {}
    i = np.arange(tile_t)
    k = np.arange(kernel_size)
    for t in range(n_t):
        lo = max(t * tile_t * stride - pad, 0)
        start = max(min(_round_down(lo, 8), l_pad - w_in), 0)   # 8-aligned, in-bounds
        starts[t] = start
        # source rows (replicate padding == clamp into [0, L-1]) relative to window
        src = (t * tile_t + i)[:, None] * stride + k[None, :] - pad
        src = np.clip(src, 0, L - 1) - start
        assert src.min() >= 0 and src.max() < w_in, (t, start, w_in)
        a_t = np.zeros((tile_t, w_in), np.float32)
        np.add.at(a_t, (np.repeat(i, kernel_size), src.reshape(-1)),
                  np.float32(1.0 / kernel_size))
        key = a_t.tobytes()
        if key not in keys:
            keys[key] = len(uniq)
            uniq.append(a_t)
        a_idx[t] = keys[key]
    return starts, a_idx, np.stack(uniq, axis=0)


def moving_avg(x, kernel_size, stride, *, tile_t=256):
    """x: (B, L, C) -> (B, L_out, C), matching the PyTorch moving_avg module."""
    B, L, C = x.shape
    pad = (kernel_size - 1) // 2
    l_out = (L + 2 * pad - kernel_size) // stride + 1
    assert l_out >= 1, "sequence too short for this kernel_size/stride"

    dtype = x.dtype
    itemsize = int(jnp.dtype(dtype).itemsize)
    # MXU-friendly operand dtype for A: match sub-32-bit float inputs, else f32.
    if jnp.issubdtype(dtype, jnp.floating) and itemsize < 4:
        a_dtype = dtype
    else:
        a_dtype = jnp.float32
    a_itemsize = int(jnp.dtype(a_dtype).itemsize)

    # ---- layout: fold batch into the lane axis when C is not lane-dense ----
    l_pad = _round_up(L, 8)
    fold = (C % 128 != 0)
    if fold:
        n_cols = B * C
        total_c = _round_up(n_cols, 128)
        x2 = jnp.transpose(x, (1, 0, 2)).reshape(L, n_cols)     # lane axis = (b, c)
        x2 = jnp.pad(x2, ((0, l_pad - L), (0, total_c - n_cols)))
        xk = x2[None]                                           # (1, L_pad, total_c)
        nb = 1
    else:
        xk = x if l_pad == L else jnp.pad(x, ((0, 0), (0, l_pad - L), (0, 0)))
        nb, total_c = B, C

    # ---- time tiling: keep the matmul inner dim (w_in) bounded (~<=512) ----
    W_IN_CAP = 512
    cap_t = max(8, _round_down((W_IN_CAP - kernel_size - 7) // max(stride, 1) + 1, 8))
    tile_t = max(8, _round_down(min(tile_t, cap_t, _round_up(l_out, 8)), 8))
    n_t = pl.cdiv(l_out, tile_t)
    w_need = (tile_t - 1) * stride + kernel_size
    w_in = min(_round_up(w_need + 7, 8), l_pad)      # +7 slack for 8-aligned starts

    starts, a_idx, a_mats = _build_tiles(L, l_pad, n_t, kernel_size, stride, pad,
                                         tile_t, w_in)
    n_uniq = a_mats.shape[0]

    # ---- channel tiling under a generation-aware VMEM budget ----
    try:
        vmem_cap = int(pltpu.get_tpu_info().vmem_capacity_bytes)
    except Exception:
        vmem_cap = 64 * 1024 * 1024                  # conservative (v7x-sized) fallback
    budget = int(vmem_cap * 0.6)

    def vmem_est(tc):
        return (2 * l_pad * tc * itemsize                     # x slab (double buffered)
                + 2 * tile_t * tc * itemsize                  # out block
                + 2 * n_uniq * tile_t * w_in * a_itemsize     # resident A stack
                + 2 * tile_t * tc * 4                         # f32 matmul result
                + 2 * w_in * tc * itemsize)                   # headroom for temps

    max_tc = min(_round_up(total_c, 128), 1024)
    tile_c = 128
    for tc in range(max_tc, 127, -128):
        if vmem_est(tc) <= budget:
            tile_c = tc
            break
    # NOTE: extremely long L (resident full-L slab > VMEM even at 128 lanes) would
    # need time-tiling of the input; typical series-decomp lengths are fine.
    n_c = pl.cdiv(total_c, tile_c)

    vmem_limit = int(min(int(vmem_cap * 0.75),
                         max(2 * vmem_est(tile_c), 32 * 1024 * 1024)))

    kernel = functools.partial(_moving_avg_kernel, w_in=w_in)

    out = pl.pallas_call(
        kernel,
        out_shape=jax.ShapeDtypeStruct((nb, l_out, total_c), dtype),
        grid_spec=pltpu.PrefetchScalarGridSpec(
            num_scalar_prefetch=2,                    # a_idx, starts -> SMEM
            grid=(nb, n_c, n_t),
            in_specs=[
                # deduped A stack, fully resident (block index never changes)
                pl.BlockSpec((n_uniq, tile_t, w_in),
                             lambda b, c, t, aidx, st: (0, 0, 0)),
                # input slab: block index fixed along t -> DMA'd once per (b, c)
                pl.BlockSpec((1, l_pad, tile_c),
                             lambda b, c, t, aidx, st: (b, 0, c)),
            ],
            out_specs=pl.BlockSpec((1, tile_t, tile_c),
                                   lambda b, c, t, aidx, st: (b, t, c)),
        ),
        compiler_params=pltpu.CompilerParams(
            # t is "arbitrary": megacore must not split it or the resident x slab
            # gets re-fetched per core (2x x HBM traffic on v7x).
            dimension_semantics=("parallel", "parallel", "arbitrary"),
            vmem_limit_bytes=vmem_limit,
        ),
    )(jnp.asarray(a_idx), jnp.asarray(starts),
      jnp.asarray(a_mats, dtype=a_dtype), xk)

    if fold:
        out = out[0, :, :B * C].reshape(l_out, B, C).transpose(1, 0, 2)
    return out


def _moving_avg_ref(x, kernel_size, stride):
    """Pure-JAX reference replicating the PyTorch forward (f32 compute)."""
    pad = (kernel_size - 1) // 2
    xf = x.astype(jnp.float32)
    front = jnp.repeat(xf[:, 0:1, :], pad, axis=1)
    end = jnp.repeat(xf[:, -1:, :], pad, axis=1)
    x_pad = jnp.concatenate([front, xf, end], axis=1)
    l_pad = x_pad.shape[1]
    l_out = (l_pad - kernel_size) // stride + 1
    windows = jnp.stack(
        [x_pad[:, t * stride:t * stride + kernel_size, :] for t in range(l_out)],
        axis=1,
    )  # (B, L_out, K, C)
    return windows.mean(axis=2)


def _check(B, L, C, kernel_size, stride, seed, dtype=jnp.float32,
           atol=1e-4, rtol=1e-4, **kw):
    key = jax.random.PRNGKey(seed)
    x = jax.random.normal(key, (B, L, C), dtype=jnp.float32).astype(dtype)
    out = jax.block_until_ready(moving_avg(x, kernel_size, stride, **kw))
    ref = _moving_avg_ref(x, kernel_size, stride)
    assert out.shape == ref.shape, (out.shape, ref.shape)
    err = float(jnp.max(jnp.abs(out.astype(jnp.float32) - ref)))
    assert jnp.allclose(out.astype(jnp.float32), ref, atol=atol, rtol=rtol), (
        f"mismatch B={B} L={L} C={C} K={kernel_size} S={stride} dtype={dtype}: "
        f"max err {err}")


if __name__ == "__main__":
    # primary small config (typical (B, L, C) time-series input, small C -> fold path)
    _check(B=2, L=16, C=8, kernel_size=5, stride=1, seed=0)
    # multi-tile + large kernel (Autoformer-style K=25), exercises A dedup/selection
    _check(B=2, L=40, C=8, kernel_size=25, stride=1, seed=0, tile_t=16)
    # strided pooling path (stride folded into the banded matrix)
    _check(B=1, L=32, C=8, kernel_size=5, stride=2, seed=0)
    # lane-dense channel path (C % 128 == 0, no batch folding)
    _check(B=2, L=40, C=128, kernel_size=5, stride=1, seed=0)
    # non-multiple-of-8 sequence length + C=7 (series-decomp default channel count)
    _check(B=2, L=19, C=7, kernel_size=7, stride=1, seed=0)
    # bf16 inputs -> bf16 A operands (f32 accumulation); looser tolerance for bf16 taps
    _check(B=2, L=16, C=8, kernel_size=5, stride=1, seed=0,
           dtype=jnp.bfloat16, atol=5e-2, rtol=5e-2)
    print("KERNEL_OK")
</pallas_src>

<mosaic_0001>
module attributes {stable_mosaic.version = 11 : i64} {
  func.func @_moving_avg_kernel(%arg0: i32, %arg1: i32, %arg2: i32, %arg3: memref<1xi32, #tpu.memory_space<smem>>, %arg4: memref<1xi32, #tpu.memory_space<smem>>, %arg5: memref<1x16x16xf32, #tpu.memory_space<vmem>>, %arg6: memref<1x16x128xf32, #tpu.memory_space<vmem>>, %arg7: memref<1x16x128xf32, #tpu.memory_space<vmem>>) attributes {dimension_semantics = [#tpu.dimension_semantics<parallel>, #tpu.dimension_semantics<parallel>, #tpu.dimension_semantics<arbitrary>], iteration_bounds = array<i64: 1, 1, 1>, scalar_prefetch = 2 : i64, scratch_operands = 0 : i64, tpu.core_type = #tpu.core_type<tc>, window_params = [{pipeline_mode = #tpu.pipeline_mode<synchronous>, transform_indices = @transform_0, window_bounds = array<i64: 1, 16, 16>}, {transform_indices = @transform_1, window_bounds = array<i64: 1, 16, 128>}, {transform_indices = @transform_2, window_bounds = array<i64: 1, 16, 128>}]} {
    %0 = arith.index_cast %arg2 : i32 to index
    %1 = memref.load %arg4[%0] : memref<1xi32, #tpu.memory_space<smem>>
    %2 = tpu.assume_multiple %1, 8 : i32
    %3 = arith.index_cast %arg2 : i32 to index
    %4 = memref.load %arg3[%3] : memref<1xi32, #tpu.memory_space<smem>>
    %5 = arith.index_cast %4 : i32 to index
    %c0 = arith.constant 0 : index
    %c0_0 = arith.constant 0 : index
    %6 = vector.load %arg5[%5, %c0, %c0_0] : memref<1x16x16xf32, #tpu.memory_space<vmem>>, vector<1x16x16xf32>
    %7 = vector.shape_cast %6 : vector<1x16x16xf32> to vector<16x16xf32>
    %c0_1 = arith.constant 0 : index
    %8 = arith.index_cast %2 : i32 to index
    %c0_2 = arith.constant 0 : index
    %9 = vector.load %arg6[%c0_1, %8, %c0_2] : memref<1x16x128xf32, #tpu.memory_space<vmem>>, vector<1x16x128xf32>
    %10 = vector.shape_cast %9 : vector<1x16x128xf32> to vector<16x128xf32>
    %cst = arith.constant dense<0.000000e+00> : vector<16x128xf32>
    %11 = tpu.matmul %7, %10, %cst {dimension_numbers = #tpu.dot_dimension_numbers<[1], [0], [0], [1], [0, 0, 1, 1], [], []>} : vector<16x16xf32>, vector<16x128xf32>, vector<16x128xf32> -> vector<16x128xf32>
    %c0_3 = arith.constant 0 : index
    %c0_4 = arith.constant 0 : index
    %c0_5 = arith.constant 0 : index
    %12 = vector.load %arg7[%c0_3, %c0_4, %c0_5] : memref<1x16x128xf32, #tpu.memory_space<vmem>>, vector<1x16x128xf32>
    %13 = vector.shape_cast %12 : vector<1x16x128xf32> to vector<16x128xf32>
    %14 = vector.shape_cast %11 : vector<16x128xf32> to vector<1x16x128xf32>
    tpu.vector_store %arg7[%c0_3, %c0_4, %c0_5], %14 {strides = array<i32>} : memref<1x16x128xf32, #tpu.memory_space<vmem>>, vector<1x16x128xf32>,
    return
  }
  func.func @transform_0(%arg0: i32, %arg1: i32, %arg2: i32, %arg3: memref<1xi32, #tpu.memory_space<smem>>, %arg4: memref<1xi32, #tpu.memory_space<smem>>) -> (i32, i32, i32) {
    %c0_i32 = arith.constant 0 : i32
    %c0_i32_0 = arith.constant 0 : i32
    %c0_i32_1 = arith.constant 0 : i32
    %c0_i32_2 = arith.constant 0 : i32
    return %c0_i32, %c0_i32_0, %c0_i32_1 : i32, i32, i32
  }
  func.func @transform_1(%arg0: i32, %arg1: i32, %arg2: i32, %arg3: memref<1xi32, #tpu.memory_space<smem>>, %arg4: memref<1xi32, #tpu.memory_space<smem>>) -> (i32, i32, i32) {
    %c0_i32 = arith.constant 0 : i32
    %c0_i32_0 = arith.constant 0 : i32
    return %arg0, %c0_i32, %arg1 : i32, i32, i32
  }
  func.func @transform_2(%arg0: i32, %arg1: i32, %arg2: i32, %arg3: memref<1xi32, #tpu.memory_space<smem>>, %arg4: memref<1xi32, #tpu.memory_space<smem>>) -> (i32, i32, i32) {
    %c0_i32 = arith.constant 0 : i32
    return %arg0, %arg2, %arg1 : i32, i32, i32
  }
}

</mosaic_0001>

<bundles_post_ra>
// kernel: tpu_custom_call.1
= control target key start
LH: loop header
LB: loop body
LE: loop exit
PB: predicated region body
PF: predicated region fallthrough
CT: control target
= control target key end

     0   :  { %11 = vsyncpa [#allocation6], 0  ;;  %s334_s0 = inlined_call_operand.<no memory space> [shape: s32[1], index: 0, kind: input, shape index: {}]   ;;  %s335_s1 = inlined_call_operand.<no memory space> [shape: s32[1], index: 1, kind: input, shape index: {}]   ;;  %s336_s2 = inlined_call_operand.hbm [shape: f32[1,16,16], index: 2, kind: input, shape index: {}]   ;;  %s337_s3 = inlined_call_operand.hbm [shape: f32[1,16,128], index: 3, kind: input, shape index: {}]   ;;  %s338_s4 = inlined_call_operand.hbm [shape: f32[1,16,128], index: 4, kind: output, shape index: {}]  }
   0x1   :  { %12 = vsyncpa [#allocation9], 0 }
   0x2   :  { %13 = vsyncpa [#allocation7], 0  ;;  %s253_s15 = smov [#allocation5]   ;;  %s181_s19 = scalar_lea.hbm %s336_s2, 256 }
   0x3   :  { %s19_s16 = sshll.u32 %s253_s15, 4  ;;  %p182_p0 = scmp.ne.s32.totalorder %s336_s2, %s181_s19  ;;  %s20_s16 = int_to_ptr.vmem [resolvable:$true] %s19_s16 }
   0x4   :  { %p185_p1 = scmp.lt.u32.totalorder %s181_s19, %s336_s2 }
   0x6   :  { %p187_p2 = pnand %p185_p1, %p182_p0 }
   0x8   :  { %190 = shalt.err (!%p187_p2)
}
   0x9   :  { %s191_s24 = scalar_lea.vmem %s20_s16, 256  ;;  %p196_p4 = scmp.lt.s32.totalorder %s20_s16, %s20_s16 }
   0xa   :  { %p192_p3 = scmp.ne.s32.totalorder %s20_s16, %s191_s24  ;;  %p197_p5 = scmp.lt.s32.totalorder %s191_s24, %s191_s24 }
   0xc   :  { %p198_p6 = por %p197_p5, %p196_p4 }
   0xe   :  { %p199_p7 = pnand %p198_p6, %p192_p3 }
  0x10   :  { %202 = shalt.err (!%p199_p7)
}
  0x11   :  { %s254_s25 = smov 128   ;;  %s255_s26 = smov 8  }
  0x12   :  { %25 = dma.hbm_to_vmem [thread:$0]  %s336_s2, 256, %s20_s16, [#allocation6], %s254_s25, %s254_s25, %s255_s26  }
  0x13   :  { %s256_s29 = smov [#allocation8]   ;;  %s203_s7 = scalar_lea.hbm %s337_s3, 256 }
  0x14   :  { %s31_s30 = sshll.u32 %s256_s29, 4  ;;  %p204_p8 = scmp.ne.s32.totalorder %s337_s3, %s203_s7  ;;  %s32_s30 = int_to_ptr.vmem [resolvable:$true] %s31_s30 }
  0x15   :  { %p207_p9 = scmp.lt.u32.totalorder %s203_s7, %s337_s3 }
  0x17   :  { %p209_p10 = pnand %p207_p9, %p204_p8 }
  0x19   :  { %212 = shalt.err (!%p209_p10)
}
  0x1a   :  { %s213_s12 = scalar_lea.vmem %s32_s30, 256  ;;  %p218_p12 = scmp.lt.s32.totalorder %s32_s30, %s32_s30 }
  0x1b   :  { %p214_p11 = scmp.ne.s32.totalorder %s32_s30, %s213_s12  ;;  %p219_p13 = scmp.lt.s32.totalorder %s213_s12, %s213_s12 }
  0x1d   :  { %p220_p0 = por %p219_p13, %p218_p12 }
  0x1f   :  { %p221_p1 = pnand %p220_p0, %p214_p11 }
  0x21   :  { %224 = shalt.err (!%p221_p1)
}
  0x22   :  { %37 = dma.hbm_to_vmem [thread:$0]  %s337_s3, 256, %s32_s30, [#allocation9], %s254_s25, %s254_s25, %s255_s26  }
  0x23   :  { %247 = dma.done.wait [#allocation6], 256  }
  0x24   :  { %248 = vsyncadd [#allocation6], 4294967040 }
  0x25   :  { %249 = dma.done.wait [#allocation9], 256  }
  0x26   :  { %250 = vsyncadd [#allocation9], 4294967040  ;;  %s158_s16 = sshll.u32 %s334_s0, 4  ;;  %vm53_vm0 = vcmask 130048   ;;  %s50_s19 = scalar_lea.vmem [#allocation8], %s335_s1 }
  0x27   :  { %v51_v0 = vld [vmem:[%s50_s19] sm:$0xff]  ;;  %v52_v1 = vld [vmem:[%s50_s19 + $0x8] sm:$0xff]  ;;  %s47_s20 = scalar_lea.vmem [#allocation5], %s158_s16  ;;  %s257_s3 = smov [#allocation10]  }
  0x28   :  { %v48_v2 = vld [vmem:[%s47_s20] sm:$0xff]  ;;  %v172_v3 = vpack.c.bf16 %v52_v1, %v51_v0  ;;  %v49_v4 = vld [vmem:[%s47_s20 + $0x8] sm:$0xff]  ;;  %s142_s21 = sshll.u32 %s257_s3, 4  ;;  %s143_s21 = int_to_ptr.vmem [resolvable:$true] %s142_s21 }
  0x29   :  { %169 = vmatprep.mubr.msk.f32.mxu0 %vm53_vm0, %v48_v2  ;;  %s225_s0 = scalar_lea.vmem %s143_s21, 256  ;;  %p230_p3 = scmp.lt.s32.totalorder %s143_s21, %s143_s21 }
  0x2a   :  { %173 = vmatprep.subr.bf16.mxu0 %v172_v3  ;;  %p226_p2 = scmp.ne.s32.totalorder %s143_s21, %s225_s0  ;;  %p231_p4 = scmp.lt.s32.totalorder %s225_s0, %s225_s0 }
  0x2b   :  { %175 = vmatpush3.bf16.msra.mxu0 %v172_v3 }
  0x2c   :  { %p232_p5 = por %p231_p4, %p230_p3 }
  0x2e   :  { %170 = vmatmul.mubr.msk.f32.vlgmr.msra.gmra.mrb[0].mxu0 %vm53_vm0, %v49_v4  ;;  %p233_p6 = pnand %p232_p5, %p226_p2 }
 0x101   :  { %v171_v5 = vpop.f32.mrb[0].mxu0 }
 0x102   :  { %136 = vst [vmem:[#allocation10 + $0x8] sm:$0xff] %v171_v5  ;;  %v126_v6 = vpop.f32.mrb[1].mxu0 }
 0x103   :  { %135 = vst [vmem:[#allocation10] sm:$0xff] %v126_v6 }
 0x104   :  { %236 = shalt.err (!%p233_p6)
}
 0x105   :  { %s237_s23 = scalar_lea.hbm %s338_s4, 256 }
 0x106   :  { %p238_p7 = scmp.ne.s32.totalorder %s338_s4, %s237_s23  ;;  %p241_p8 = scmp.lt.u32.totalorder %s237_s23, %s338_s4 }
 0x108   :  { %p243_p9 = pnand %p241_p8, %p238_p7 }
 0x10a   :  { %246 = shalt.err (!%p243_p9)
}
 0x10b   :  { %148 = dma.vmem_to_hbm [thread:$0]  %s143_s21, 256, %s338_s4, [#allocation7], %s254_s25, %s254_s25, %s255_s26  }
 0x10c   :  { %251 = dma.done.wait [#allocation7], 256  }
 0x10d   :  { %252 = vsyncadd [#allocation7], 4294967040 }
 0x10e   :  { %152 = vsyncpa [#allocation6], 1 }
 0x10f   :  { %153 = vsyncpa [#allocation9], 1 }
 0x110   :  { %154 = vsyncpa [#allocation7], 1 }

</bundles_post_ra>
